<compile_context>
chip_gen: v7x
topology: tpu7x:2x2x1
jax: 0.10.0
libtpu: 0.0.40
codegen_flags: <defaults>
</compile_context>

<pallas_src>
import functools

import numpy as np
import jax
import jax.numpy as jnp
from jax import lax
from jax.experimental import pallas as pl
from jax.experimental.pallas import tpu as pltpu

BN_EPS = 1e-5
N_FEAT = 200                      # BatchNorm1d / channel dim (on lanes)
L_IN = 16                         # length after Linear(1, 16)
L_OUT = 8                         # length after AvgPool1d(3, 2, 1)
DEFAULT_TILE_BS = 4096            # bigger tiles -> ~3% pipeline overhead, fits 48 MiB VMEM budget
NUM_STAT_SHARDS = 2               # v7x: run the stats pass on both TensorCores
VMEM_LIMIT_BYTES = 48 * 1024 * 1024


def _pool_matrix() -> np.ndarray:
    """AvgPool1d(kernel=3, stride=2, padding=1, count_include_pad=True) as a (16, 8) matrix."""
    P = np.zeros((L_IN, L_OUT), np.float32)
    for l in range(L_OUT):
        for j in (2 * l - 1, 2 * l, 2 * l + 1):
            if 0 <= j < L_IN:
                P[j, l] = 1.0 / 3.0
    return P


def _bn_stats_kernel(x_ref, pivot_ref, sum_ref, sumsq_ref, *,
                     tile_bs, bs, tiles_per_shard, need_mask):
    """Pass 1: per-shard, pivot-centered per-feature sum and sum-of-squares."""
    s = pl.program_id(0)          # shard ("parallel": split across TCs on v7x)
    t = pl.program_id(1)          # tile within shard ("arbitrary": accumulator axis)

    @pl.when(t == 0)
    def _init():
        sum_ref[...] = jnp.zeros_like(sum_ref)
        sumsq_ref[...] = jnp.zeros_like(sumsq_ref)

    # Pivot-centered accumulation keeps var = E[xc^2] - E[xc]^2 numerically stable.
    xc = x_ref[...] - pivot_ref[...]                              # (tile_bs, 200)
    if need_mask:
        # Mask rows past bs. Covers partial last tiles AND fully-out-of-range shard-padding
        # tiles (whose DMA index is clamped in the index_map but whose logical rows are >= bs).
        g = s * tiles_per_shard + t
        row = g * tile_bs + lax.broadcasted_iota(jnp.int32, xc.shape, 0)
        xc = jnp.where(row < bs, xc, 0.0)

    sum_ref[...] += jnp.sum(xc, axis=0).reshape(sum_ref.shape)          # (1, 1, 200)
    sumsq_ref[...] += jnp.sum(xc * xc, axis=0).reshape(sumsq_ref.shape)  # (1, 1, 200)


def _fused_mlp_kernel(x_ref, sum_ref, sumsq_ref, pivot_ref, t_ref, c_ref, b1_ref, out_ref,
                      *, inv_n, signs, active, use_mxu):
    """Pass 2: normalize with global batch stats and run the fused MLP, lane-dense in (bs, 200)."""
    x = x_ref[...]                                                # (tile_bs, 200)

    # BatchNorm1d(200, affine=False), training-mode batch stats (biased variance).
    cmean = sum_ref[...] * inv_n                                  # pivot-centered mean (1, 200)
    var = sumsq_ref[...] * inv_n - cmean * cmean
    mean = pivot_ref[...] + cmean
    rstd = lax.rsqrt(var + BN_EPS)
    xn = (x - mean) * rstd                                        # (tile_bs, 200)

    # out[b] = b1 + sum_j dot_i( relu(s_j*xn[b,i] + t_j), |w0_j|*C[j,i] )
    if use_mxu:
        # c_ref is (200, 16): per-j accumulating matvec on the MXU (K-reduce done by the MXU).
        acc = jnp.zeros((x.shape[0], 1), jnp.float32)
        for j in range(L_IN):
            if not active[j]:
                continue
            pre = (xn + t_ref[j]) if signs[j] > 0 else (t_ref[j] - xn)
            h_j = jnp.maximum(pre, 0.0)                           # 2 VALU ops per j
            acc = acc + jnp.dot(h_j, c_ref[:, j:j + 1],
                                preferred_element_type=jnp.float32)
        out_ref[...] = acc + b1_ref[0]                            # (tile_bs, 1)
    else:
        # VPU fallback (v5e escape hatch): c_ref is (16, 200); keep the 4-op mul/add form.
        acc = jnp.zeros_like(xn)
        for j in range(L_IN):
            if not active[j]:
                continue
            pre = (xn + t_ref[j]) if signs[j] > 0 else (t_ref[j] - xn)
            h_j = jnp.maximum(pre, 0.0)
            acc = acc + h_j * c_ref[j:j + 1, :]
        out_ref[...] = jnp.sum(acc, axis=1, keepdims=True) + b1_ref[0]


def model1_forward(x, w0, b0, w1, b1, *, tile_bs=DEFAULT_TILE_BS, use_mxu=True):
    """x: (bs, 200) f32.  PyTorch-shaped params: w0 (16,1), b0 (16,), w1 (1,1600), b1 (1,)."""
    x = jnp.asarray(x, jnp.float32)
    bs, nfeat = x.shape
    assert nfeat == N_FEAT

    tile_bs = int(min(tile_bs, bs))
    if tile_bs < bs:
        tile_bs = min(bs, ((tile_bs + 7) // 8) * 8)   # keep sublane-aligned blocks
    num_tiles = pl.cdiv(bs, tile_bs)

    # ---- Host-side parameter folding (tiny, runs once; needs concrete parameter values) ----
    w0_np = np.asarray(jax.device_get(w0), np.float32).reshape(L_IN)     # Linear(1,16).weight
    b0_np = np.asarray(jax.device_get(b0), np.float32).reshape(L_IN)
    w1_np = np.asarray(jax.device_get(w1), np.float32).reshape(N_FEAT, L_OUT)
    b1_np = np.asarray(jax.device_get(b1), np.float32).reshape(1)

    # Fold AvgPool1d(3,2,1) and Linear(1600,1): C[j, i] = sum_l P[j, l] * w1.reshape(200,8)[i, l]
    C = _pool_matrix() @ w1_np.T                                         # (16, 200)
    absw = np.abs(w0_np)
    active = tuple(bool(a) for a in (absw > 0.0))
    signs = tuple(int(s) for s in np.where(w0_np >= 0.0, 1, -1))
    t_shift = np.where(absw > 0.0, b0_np / np.where(absw > 0.0, absw, 1.0), 0.0).astype(np.float32)
    c_scaled = (C * absw[:, None]).astype(np.float32)                    # |w0_j| folded into C
    b1_eff = float(b1_np[0])
    for j in range(L_IN):
        if not active[j]:   # w0_j == 0: constant contribution relu(b0_j)*sum_i C[j,i] -> bias
            b1_eff += float(max(float(b0_np[j]), 0.0) * np.sum(C[j, :]))

    c_mat = jnp.asarray(c_scaled.T if use_mxu else c_scaled)             # (200,16) or (16,200)
    t_arr = jnp.asarray(t_shift)                                         # (16,)  -> SMEM
    b1_arr = jnp.asarray(np.array([b1_eff], np.float32))                 # (1,)   -> SMEM
    pivot = x[0:1, :]                                                    # (1, 200) per-feature pivot

    smem = pl.BlockSpec(memory_space=pltpu.MemorySpace.SMEM)

    # ---- Pass 1: global BN statistics (2-way "parallel" shard axis + "arbitrary" tile axis) ----
    num_shards = NUM_STAT_SHARDS if num_tiles >= NUM_STAT_SHARDS else 1
    tps = pl.cdiv(num_tiles, num_shards)                 # tiles per shard (grid is rectangular)
    need_mask = (num_shards * tps * tile_bs != bs)

    def x_map_p1(s, t):
        # Clamp the DMA index for shard-padding tiles; their contribution is masked in-kernel.
        return (jnp.minimum(s * tps + t, num_tiles - 1), 0)

    stat_shape = jax.ShapeDtypeStruct((num_shards, 1, N_FEAT), jnp.float32)
    stat_out_spec = pl.BlockSpec((1, 1, N_FEAT), lambda s, t: (s, 0, 0))

    shard_sum, shard_sumsq = pl.pallas_call(
        functools.partial(_bn_stats_kernel, tile_bs=tile_bs, bs=bs,
                          tiles_per_shard=tps, need_mask=need_mask),
        grid=(num_shards, tps),
        in_specs=[pl.BlockSpec((tile_bs, N_FEAT), x_map_p1),
                  pl.BlockSpec((1, N_FEAT), lambda s, t: (0, 0))],
        out_specs=(stat_out_spec, stat_out_spec),
        out_shape=(stat_shape, stat_shape),
        compiler_params=pltpu.CompilerParams(
            dimension_semantics=("parallel", "arbitrary"),
            vmem_limit_bytes=VMEM_LIMIT_BYTES),
    )(x, pivot)

    feat_sum = jnp.sum(shard_sum, axis=0)        # (1, 200) combine per-shard partials (tiny)
    feat_sumsq = jnp.sum(shard_sumsq, axis=0)    # (1, 200)

    # ---- Pass 2: normalize + fused (Linear(1,16) -> ReLU -> pool+Linear folded), MXU contraction ----
    vec_spec = pl.BlockSpec((1, N_FEAT), lambda t: (0, 0))
    out = pl.pallas_call(
        functools.partial(_fused_mlp_kernel, inv_n=1.0 / bs, signs=signs,
                          active=active, use_mxu=use_mxu),
        grid=(num_tiles,),
        in_specs=[pl.BlockSpec((tile_bs, N_FEAT), lambda t: (t, 0)),
                  vec_spec, vec_spec, vec_spec,
                  smem,                                             # t_arr
                  pl.BlockSpec(tuple(c_mat.shape), lambda t: (0, 0)),
                  smem],                                            # b1
        out_specs=pl.BlockSpec((tile_bs, 1), lambda t: (t, 0)),
        out_shape=jax.ShapeDtypeStruct((bs, 1), jnp.float32),
        compiler_params=pltpu.CompilerParams(
            dimension_semantics=("parallel",),
            vmem_limit_bytes=VMEM_LIMIT_BYTES),
    )(x, feat_sum, feat_sumsq, pivot, t_arr, c_mat, b1_arr)
    return out


if __name__ == "__main__":
    key = jax.random.PRNGKey(0)
    kx, k0w, k0b, k1w, k1b = jax.random.split(key, 5)

    bs = 20
    x = jax.random.normal(kx, (bs, N_FEAT), jnp.float32)

    # Deterministic params with PyTorch nn.Linear shapes.
    w0 = jax.random.uniform(k0w, (L_IN, 1), jnp.float32, -1.0, 1.0)          # Linear(1,16).weight
    b0 = jax.random.uniform(k0b, (L_IN,), jnp.float32, -1.0, 1.0)            # Linear(1,16).bias
    bound1 = float(1.0 / np.sqrt(1600.0))
    w1 = jax.random.uniform(k1w, (1, 1600), jnp.float32, -bound1, bound1)    # Linear(1600,1).weight
    b1 = jax.random.uniform(k1b, (1,), jnp.float32, -bound1, bound1)         # Linear(1600,1).bias

    # MXU path with tiny tiles: exercises 2-shard stats, clamped/masked padding tile, partial tiles.
    out_mxu = jax.block_until_ready(
        model1_forward(x, w0, b0, w1, b1, tile_bs=8, use_mxu=True))
    # VPU fallback path with a single full-batch tile.
    out_vpu = jax.block_until_ready(
        model1_forward(x, w0, b0, w1, b1, use_mxu=False))

    # Plain-JAX reference of the exact PyTorch forward (training-mode BN, biased variance).
    mean = jnp.mean(x, axis=0)
    var = jnp.mean((x - mean) ** 2, axis=0)
    xn = (x - mean) / jnp.sqrt(var + BN_EPS)
    h = jax.nn.relu(xn[:, :, None] * w0.reshape(1, 1, L_IN) + b0[None, None, :])  # (bs,200,16)
    hp = jnp.pad(h, ((0, 0), (0, 0), (1, 1)))
    pooled = (hp[:, :, 0:16:2] + hp[:, :, 1:17:2] + hp[:, :, 2:18:2]) / 3.0        # (bs,200,8)
    ref = pooled.reshape(bs, 1600) @ w1.reshape(1600, 1) + b1                      # (bs,1)

    assert out_mxu.shape == (bs, 1) and out_vpu.shape == (bs, 1)
    # VPU path is pure f32 -> tight tolerance; MXU path left a little slack for MXU f32 rounding.
    assert jnp.allclose(out_vpu, ref, atol=1e-4, rtol=1e-4), (out_vpu, ref)
    assert jnp.allclose(out_mxu, ref, atol=2e-3, rtol=2e-3), (out_mxu, ref)
    print("KERNEL_OK")
</pallas_src>

<mosaic_0001>
module attributes {stable_mosaic.version = 11 : i64} {
  func.func @_bn_stats_kernel(%arg0: i32, %arg1: i32, %arg2: memref<8x200xf32, #tpu.memory_space<vmem>>, %arg3: memref<1x200xf32, #tpu.memory_space<vmem>>, %arg4: memref<1x1x200xf32, #tpu.memory_space<vmem>>, %arg5: memref<1x1x200xf32, #tpu.memory_space<vmem>>) attributes {dimension_semantics = [#tpu.dimension_semantics<parallel>, #tpu.dimension_semantics<arbitrary>], iteration_bounds = array<i64: 2, 2>, scalar_prefetch = 0 : i64, scratch_operands = 0 : i64, tpu.core_type = #tpu.core_type<tc>, window_params = [{transform_indices = @transform_0, window_bounds = array<i64: 8, 200>}, {pipeline_mode = #tpu.pipeline_mode<synchronous>, transform_indices = @transform_1, window_bounds = array<i64: 1, 200>}, {transform_indices = @transform_2, window_bounds = array<i64: 1, 1, 200>}, {transform_indices = @transform_3, window_bounds = array<i64: 1, 1, 200>}]} {
    %c0_i32 = arith.constant 0 : i32
    %0 = arith.cmpi eq, %arg1, %c0_i32 : i32
    %1 = arith.extui %0 : i1 to i32
    %c0_i32_0 = arith.constant 0 : i32
    %2 = arith.cmpi ne, %1, %c0_i32_0 : i32
    scf.if %2 {
      %cst_18 = arith.constant 0.000000e+00 : f32
      %28 = vector.broadcast %cst_18 : f32 to vector<1x1x200xf32>
      %c0_19 = arith.constant 0 : index
      %c0_20 = arith.constant 0 : index
      %c0_21 = arith.constant 0 : index
      %29 = vector.load %arg4[%c0_19, %c0_20, %c0_21] : memref<1x1x200xf32, #tpu.memory_space<vmem>>, vector<1x1x200xf32>
      tpu.vector_store %arg4[%c0_19, %c0_20, %c0_21], %28 {strides = array<i32>} : memref<1x1x200xf32, #tpu.memory_space<vmem>>, vector<1x1x200xf32>,
      %cst_22 = arith.constant 0.000000e+00 : f32
      %30 = vector.broadcast %cst_22 : f32 to vector<1x1x200xf32>
      %c0_23 = arith.constant 0 : index
      %c0_24 = arith.constant 0 : index
      %c0_25 = arith.constant 0 : index
      %31 = vector.load %arg5[%c0_23, %c0_24, %c0_25] : memref<1x1x200xf32, #tpu.memory_space<vmem>>, vector<1x1x200xf32>
      tpu.vector_store %arg5[%c0_23, %c0_24, %c0_25], %30 {strides = array<i32>} : memref<1x1x200xf32, #tpu.memory_space<vmem>>, vector<1x1x200xf32>,
    } else {
    }
    %c0 = arith.constant 0 : index
    %c0_1 = arith.constant 0 : index
    %3 = vector.load %arg2[%c0, %c0_1] : memref<8x200xf32, #tpu.memory_space<vmem>>, vector<8x200xf32>
    %c0_2 = arith.constant 0 : index
    %c0_3 = arith.constant 0 : index
    %4 = vector.load %arg3[%c0_2, %c0_3] : memref<1x200xf32, #tpu.memory_space<vmem>>, vector<1x200xf32>
    %5 = vector.broadcast %4 : vector<1x200xf32> to vector<8x200xf32>
    %6 = arith.subf %3, %5 : vector<8x200xf32>
    %c2_i32 = arith.constant 2 : i32
    %7 = arith.muli %arg0, %c2_i32 : i32
    %8 = arith.addi %7, %arg1 : i32
    %c8_i32 = arith.constant 8 : i32
    %9 = arith.muli %8, %c8_i32 : i32
    %10 = tpu.iota {dimensions = array<i32: 0>} : vector<8x200xi32>
    %11 = vector.broadcast %9 : i32 to vector<8x200xi32>
    %12 = arith.addi %11, %10 : vector<8x200xi32>
    %c20_i32 = arith.constant 20 : i32
    %13 = vector.broadcast %c20_i32 : i32 to vector<8x200xi32>
    %14 = arith.cmpi slt, %12, %13 : vector<8x200xi32>
    %cst = arith.constant 0.000000e+00 : f32
    %15 = vector.broadcast %cst : f32 to vector<8x200xf32>
    %16 = arith.select %14, %6, %15 : vector<8x200xi1>, vector<8x200xf32>
    %c0_4 = arith.constant 0 : index
    %c0_5 = arith.constant 0 : index
    %c0_6 = arith.constant 0 : index
    %17 = vector.load %arg4[%c0_4, %c0_5, %c0_6] : memref<1x1x200xf32, #tpu.memory_space<vmem>>, vector<1x1x200xf32>
    %cst_7 = arith.constant dense<0.000000e+00> : vector<200xf32>
    %18 = vector.multi_reduction <add>, %16, %cst_7 [0] : vector<8x200xf32> to vector<200xf32>
    %19 = vector.shape_cast %18 : vector<200xf32> to vector<1x1x200xf32>
    %20 = arith.addf %17, %19 : vector<1x1x200xf32>
    %c0_8 = arith.constant 0 : index
    %c0_9 = arith.constant 0 : index
    %c0_10 = arith.constant 0 : index
    %21 = vector.load %arg4[%c0_8, %c0_9, %c0_10] : memref<1x1x200xf32, #tpu.memory_space<vmem>>, vector<1x1x200xf32>
    tpu.vector_store %arg4[%c0_8, %c0_9, %c0_10], %20 {strides = array<i32>} : memref<1x1x200xf32, #tpu.memory_space<vmem>>, vector<1x1x200xf32>,
    %c0_11 = arith.constant 0 : index
    %c0_12 = arith.constant 0 : index
    %c0_13 = arith.constant 0 : index
    %22 = vector.load %arg5[%c0_11, %c0_12, %c0_13] : memref<1x1x200xf32, #tpu.memory_space<vmem>>, vector<1x1x200xf32>
    %23 = arith.mulf %16, %16 : vector<8x200xf32>
    %cst_14 = arith.constant dense<0.000000e+00> : vector<200xf32>
    %24 = vector.multi_reduction <add>, %23, %cst_14 [0] : vector<8x200xf32> to vector<200xf32>
    %25 = vector.shape_cast %24 : vector<200xf32> to vector<1x1x200xf32>
    %26 = arith.addf %22, %25 : vector<1x1x200xf32>
    %c0_15 = arith.constant 0 : index
    %c0_16 = arith.constant 0 : index
    %c0_17 = arith.constant 0 : index
    %27 = vector.load %arg5[%c0_15, %c0_16, %c0_17] : memref<1x1x200xf32, #tpu.memory_space<vmem>>, vector<1x1x200xf32>
    tpu.vector_store %arg5[%c0_15, %c0_16, %c0_17], %26 {strides = array<i32>} : memref<1x1x200xf32, #tpu.memory_space<vmem>>, vector<1x1x200xf32>,
    return
  }
  func.func @transform_0(%arg0: i32, %arg1: i32) -> (i32, i32) {
    %c2_i32 = arith.constant 2 : i32
    %0 = arith.muli %arg0, %c2_i32 : i32
    %1 = arith.addi %0, %arg1 : i32
    %c2_i32_0 = arith.constant 2 : i32
    %2 = arith.minsi %1, %c2_i32_0 : i32
    %c0_i32 = arith.constant 0 : i32
    %c0_i32_1 = arith.constant 0 : i32
    return %2, %c0_i32 : i32, i32
  }
  func.func @transform_1(%arg0: i32, %arg1: i32) -> (i32, i32) {
    %c0_i32 = arith.constant 0 : i32
    %c0_i32_0 = arith.constant 0 : i32
    %c0_i32_1 = arith.constant 0 : i32
    return %c0_i32, %c0_i32_0 : i32, i32
  }
  func.func @transform_2(%arg0: i32, %arg1: i32) -> (i32, i32, i32) {
    %c0_i32 = arith.constant 0 : i32
    %c0_i32_0 = arith.constant 0 : i32
    %c0_i32_1 = arith.constant 0 : i32
    return %arg0, %c0_i32, %c0_i32_0 : i32, i32, i32
  }
  func.func @transform_3(%arg0: i32, %arg1: i32) -> (i32, i32, i32) {
    %c0_i32 = arith.constant 0 : i32
    %c0_i32_0 = arith.constant 0 : i32
    %c0_i32_1 = arith.constant 0 : i32
    return %arg0, %c0_i32, %c0_i32_0 : i32, i32, i32
  }
}

</mosaic_0001>

<bundles_post_ra>
// kernel: tpu_custom_call.1
= control target key start
LH: loop header
LB: loop body
LE: loop exit
PB: predicated region body
PF: predicated region fallthrough
CT: control target
= control target key end

     0   :  { %s1118_s0 = inlined_call_operand.hbm [shape: f32[20,200], index: 0, kind: input, shape index: {}]   ;;  %s1119_s1 = inlined_call_operand.vmem [shape: f32[1,200], index: 1, kind: input, shape index: {}]   ;;  %s1120_s2 = inlined_call_operand.hbm [shape: f32[2,1,200], index: 2, kind: output, shape index: {0}]   ;;  %s1121_s3 = inlined_call_operand.hbm [shape: f32[2,1,200], index: 3, kind: output, shape index: {1}]  }
   0x1   :  { %1124 = sst [smem:[#allocation12_spill]] %s1118_s0 }
   0x2   :  { %9 = vsyncpa [#allocation3], 0 }
   0x3   :  { %11 = vsyncpa [#allocation3 + $0x1], 0 }
   0x4   :  { %12 = vsyncpa [#allocation4], 0 }
   0x5   :  { %14 = vsyncpa [#allocation4 + $0x1], 0 }
   0x6   :  { %15 = vsyncpa [#allocation7], 0 }
   0x7   :  { %17 = vsyncpa [#allocation7 + $0x1], 0  ;;  %s832_s12 = smov 0   ;;  %s834_s13 = smov 0  }
   0x8   :  { %s836_s14 = smov 0   ;;  %s838_s15 = smov 0  }
   0x9   :  { %s840_s16 = smov 0   ;;  %s842_s17 = smov 0  }
   0xa   :  { %s844_s18 = smov 0   ;;  %s846_s19 = smov 0  }
   0xb   :  { %s848_s20 = smov 0   ;;  %s850_s21 = smov 0  }
   0xc   :  { %s852_s22 = smov 0  }
   0xd LB: > { %s484_s23 = sadd.s32 4294967295, %s805_s22   ;;  %s485_s24 = sadd.s32 4294967294, %s805_s22   ;;  %s805_s22 = sphi %s852_s22, %s23_s22   ;;  %s801_s21 = sphi %s850_s21, %s1148_s21   ;;  %s797_s20 = sphi %s848_s20, %s1147_s20   ;;  %s793_s19 = sphi %s846_s19, %s1146_s19   ;;  %s789_s18 = sphi %s844_s18, %s1145_s18   ;;  %s785_s17 = sphi %s842_s17, %s1144_s17   ;;  %s781_s16 = sphi %s840_s16, %s1143_s16   ;;  %s777_s15 = sphi %s838_s15, %s1142_s15   ;;  %s773_s14 = sphi %s836_s14, %s1141_s14   ;;  %s769_s13 = sphi %s834_s13, %s1140_s13   ;;  %s765_s12 = sphi %s832_s12, %s1139_s12  }
   0xe   : > { %s32_s25 = sadd.s32 1, %s797_s20  ;;  %s35_s26 = sadd.s32 1, %s801_s21 }
   0xf   : > { %p33_p0 = scmp.ge.s32.totalorder %s32_s25, 2  ;;  %s486_s27 = sshll.u32 %s801_s21, 1 }
  0x10   : > { %s40_s28 = sadd.s32 %s797_s20, %s486_s27  ;;  %s50_s29 = sadd.s32 1, %s785_s17 }
  0x11   : > { %s1150_s25 = smov (%p33_p0, %s32_s25), 0  ;;  %s1152_s26 = smov (!%p33_p0, %s35_s26), %s801_s21 }
  0x12   : > { %p41_p1 = scmp.lt.s32.totalorder %s40_s28, 2  ;;  %p57_p2 = scmp.ne.s32.totalorder %s785_s17, %s781_s16 }
  0x13   : > { %p37_p3 = scmp.ge.s32.totalorder %s1152_s26, 2  ;;  %p58_p4 = scmp.eq.s32.totalorder %s805_s22, 0 }
  0x14   : > { %s1154_s28 = smov (!%p41_p1, %s40_s28), 2  ;;  %p63_p6 = scmp.ne.s32.totalorder %s781_s16, %s777_s15 }
  0x15   : > { %s1156_s26 = smov (%p37_p3, %s1152_s26), 0  ;;  %p902_p5 = por %p58_p4, %p57_p2 }
  0x16   : > { %1125 = sst [smem:[#allocation11_spill]] %s1156_s26  ;;  %s487_s4 = sshll.u32 %s1156_s26, 1 }
  0x17   : > { %p64_p7 = scmp.eq.s32.totalorder %s484_s23, 0  ;;  %s44_s5 = sadd.s32 %s487_s4, %s1150_s25 }
  0x18   : > { %s94_s6 = ssub.s32 %s801_s21, %s1156_s26  ;;  %p45_p8 = scmp.lt.s32.totalorder %s44_s5, 2 }
  0x19   : > { %p914_p9 = por %p64_p7, %p63_p6  ;;  %p95_p10 = scmp.eq.s32.totalorder %s94_s6, 0 }
  0x1a   : > { %s97_s8 = sadd.s32 1, %s773_s14  ;;  %s1158_s5 = smov (!%p45_p8, %s44_s5), 2 }
  0x1b   : > { %s920_s9 = scalar_select %p95_p10, %s773_s14, %s97_s8  }
  0x1c   : > { %s47_s10 = ssub.s32 %s1154_s28, %s1158_s5  ;;  %p107_p11 = scmp.ne.s32.totalorder %s773_s14, %s769_s13 }
  0x1d   : > { %p48_p12 = scmp.eq.s32.totalorder %s47_s10, 0  ;;  %p108_p13 = scmp.eq.s32.totalorder %s484_s23, 3 }
  0x1e   : > { %p113_p0 = scmp.ne.s32.totalorder %s769_s13, %s765_s12  ;;  %p114_p1 = scmp.eq.s32.totalorder %s485_s24, 3 }
  0x1f   : > { %s931_s11 = scalar_select %p48_p12, %s785_s17, %s50_s29  }
  0x20   : > { %p933_p2 = por %p108_p13, %p107_p11  ;;  %p937_p3 = por %p114_p1, %p113_p0 }
  0x21   : > { %p529_p4 = scmp.lt.s32.totalorder %s805_s22, 4  ;;  %s163_s4 = sand.u32 1, %s785_s17  }
  0x22   : > { %s1128_s15 = scalar_select %p933_p2, 1, 0 }
  0x23   : > { %s1129_s27 = scalar_select %p937_p3, 1, 0 }
  0x24   : > { %s509_s5 = sshll.u32 %s1154_s28, 8  ;;  %s490_s6 = sshll.u32 %s163_s4, 4 }
  0x25   : > { %s1130_s0 = sld [smem:[#allocation12_spill]]  ;;  %s167_s24 = scalar_lea.vmem [#allocation2], %s490_s6 }
  0x26   : > { %s179_s29 = sshll.u32 %s167_s24, 4  ;;  %p950_p6 = pnand %p529_p4, %p902_p5  ;;  %s954_s29 = int_to_ptr.vmem [resolvable:$true] %s179_s29 }
  0x27   : > { %s164_s28 = scalar_lea.sflag [#allocation3], %s163_s4 }
  0x28   : > { %p623_p11 = pneg %p950_p6 }
  0x2b   : > { %s946_s10 = scalar_lea.hbm %s1130_s0, %s509_s5  ;;  %s626_s8 = scalar_lea.hbm %s1130_s0, 768 }
  0x2c   : > { %s621_s5 = scalar_lea.hbm %s946_s10, 256  ;;  %p627_p5 = scmp.lt.u32.totalorder %s946_s10, %s1130_s0 }
  0x2d   : > { %p622_p10 = scmp.ne.s32.totalorder %s946_s10, %s621_s5  ;;  %p628_p0 = scmp.lt.u32.totalorder %s626_s8, %s621_s5 }
  0x2e   : > { %p630_p4 = scmp.lt.u32.totalorder %s621_s5, %s946_s10 }
  0x2f   : > { %p624_p12 = pnand %p623_p11, %p622_p10  ;;  %p629_p1 = por %p628_p0, %p627_p5 }
  0x31   : > { %p625_p13 = pneg %p624_p12  ;;  %p631_p7 = por %p630_p4, %p629_p1 }
  0x33   : > { %p632_p8 = pnand %p631_p7, %p625_p13 }
  0x35   : > { %635 = shalt.err (!%p632_p8)
}
  0x36   : > { %s636_s4 = scalar_lea.vmem %s954_s29, 256  ;;  %s807_s30 = smov [#allocation2]  }
  0x37   : > { %p637_p10 = scmp.ne.s32.totalorder %s954_s29, %s636_s4  ;;  %s641_s6 = sshll.u32 %s807_s30, 4  ;;  %s642_s6 = int_to_ptr.vmem [resolvable:$false] %s641_s6 }
  0x38   : > { %s643_s23 = scalar_lea.vmem %s642_s6, 512  ;;  %p644_p2 = scmp.lt.s32.totalorder %s954_s29, %s642_s6 }
  0x39   : > { %p639_p12 = pnand %p637_p10, %p623_p11  ;;  %p645_p5 = scmp.lt.s32.totalorder %s643_s23, %s636_s4 }
  0x3b   : > { %p640_p3 = pneg %p639_p12  ;;  %p646_p0 = por %p645_p5, %p644_p2 }
  0x3d   : > { %p647_p1 = pnand %p646_p0, %p640_p3 }
  0x3f   : > { %650 = shalt.err (!%p647_p1)
}
  0x40   : > { %521 = dma.hbm_to_vmem [thread:$0]  (!%p950_p6), %s946_s10, 256, %s954_s29, %s164_s28  }
  0x41   : > { %p1132_p7 = scmp.lt.s32.totalorder %s805_s22, 5  ;;  %p1133_p8 = scmp.ge.s32.totalorder %s805_s22, 1 }
  0x43   : > { %p185_p11 = pnand %p1133_p8, %p1132_p7 }
  0x44   : > { %s190_s5 = sand.u32 (!%p185_p11), 1, %s781_s16  }
  0x45   : > { %188 = sbr.rel (%p185_p11) target bundleno = 156 (0x9c), region = 28  ;;  %s495_s8 = sshll.u32 (!%p185_p11), %s190_s5, 4 }
  0x46   : > { %s191_s24 = scalar_lea.sflag (!%p185_p11), [#allocation3], %s190_s5  ;;  %s194_s4 = scalar_lea.vmem (!%p185_p11), [#allocation2], %s495_s8 }
  0x4c   : > { %752 = dma.done.wait (%p914_p9), %s191_s24, 256  }
  0x4d   : > { %754 = vsyncadd (%p914_p9), %s191_s24, 4294967040  ;;  %s993_s26 = sand.u32 1, %s769_s13   ;;  %p498_p2 = scmp.ne.s32.totalorder %s789_s18, 0 }
  0x4e   : > { %s496_s10 = sshll.u32 %s993_s26, 1  ;;  %v230_v0 = vlaneseq (!%p498_p2)  ;;  %v808_v1 = vmov (!%p498_p2), 0.0  }
  0x4f   : > { %s996_s29 = scalar_lea.vmem [#allocation5], %s496_s10  ;;  %s998_s28 = scalar_lea.vmem [#allocation6], %s496_s10 }
  0x50   : > { %229 = sbr.rel (%p498_p2) target bundleno = 87 (0x57), region = 36  ;;  %vm232_vm0 = vcmp.lt.s32.totalorder (!%p498_p2), %v230_v0, 200 }
  0x51   : > { %234 = vst.msk [vmem:[%s996_s29] sm:$0x3] (!%p498_p2), %vm232_vm0, %v808_v1  ;;  %235 = vst.msk [vmem:[%s998_s28] sm:$0x3] (!%p498_p2), %vm232_vm0, %v808_v1 }
  0x57 PF: > { %v240_v2 = vlaneseq  ;;  %s499_s7 = sshll.u32 %s793_s19, 1  ;;  %v238_v4 = vld [vmem:[%s1119_s1] sm:$0x3]  ;;  %v237_v10 = vld [vmem:[%s194_s4 + $0x8] sm:$0xff]  ;;  %vm269_vm2 = vcmask 588800   ;;  %s357_s8 = sshll.u32 %s996_s29, 4  ;;  %s1022_s8 = int_to_ptr.vmem [resolvable:$true] %s357_s8 }
  0x58   : > { %s253_s30 = sadd.s32 %s789_s18, %s499_s7  ;;  %v236_v9 = vld [vmem:[%s194_s4] sm:$0xff]  ;;  %v809_v26 = vmov 1966171168   ;;  %s510_s18 = sshll.u32 %s793_s19, 5 }
  0x59   : > { %v241_v3 = vshrl.u32 %v240_v2, 7  ;;  %s500_s6 = sshll.u32 %s253_s30, 3  ;;  %v281_v27 = vunpack.c.l.s4 %v809_v26  ;;  %v262_v52 = vld [vmem:[%s996_s29] sm:$0x3]  ;;  %vm1011_vm3 = vcmp.lt.s32.totalorder %v240_v2, 200  ;;  %s371_s24 = sshll.u32 %s998_s28, 4  ;;  %s1032_s24 = int_to_ptr.vmem [resolvable:$true] %s371_s24 }
  0x5a   : > { %v257_v5 = vstv %s500_s6  ;;  %v301_v56 = vld [vmem:[%s998_s28] sm:$0x3]  ;;  %s1020_s7 = scalar_lea.hbm %s1120_s2, %s510_s18  ;;  %s1030_s6 = scalar_lea.hbm %s1121_s3, %s510_s18 }
  0x5b   : > { %v242_v6 = vsub.s32 0, %v241_v3  ;;  %v246_v7 = vsub.s32 1, %v241_v3  ;;  %v258_v8 = vadd.s32 %v257_v5, %v241_v3  ;;  %v282_v36 = vunpack.c.0.s8 %v281_v27  ;;  %s338_s23 = scalar_lea.sflag [#allocation4], %s993_s26  ;;  %s651_s5 = scalar_lea.vmem %s1022_s8, 32 }
  0x5c   : > { %p652_p9 = scmp.ne.s32.totalorder %s1022_s8, %s651_s5  ;;  %p1136_p3 = scmp.ne.s32.totalorder %s1128_s15, 0 }
  0x5d   : > { %v243_v11 = vrot.slane %v238_v4, %v242_v6  ;;  %v247_v12 = vrot.slane %v238_v4, %v246_v7  ;;  %vm259_vm1 = vcmp.lt.s32.totalorder %v258_v8, 20  ;;  %v285_v45 = vsub.s32 %v282_v36, %v241_v3  ;;  %s810_s4 = smov [#allocation5]  }
  0x5e   : > { %p653_p6 = pnand %p652_p9, %p1136_p3  ;;  %s655_s10 = sshll.u32 %s810_s4, 4  ;;  %s656_s10 = int_to_ptr.vmem [resolvable:$false] %s655_s10 }
  0x5f   : > { %v250_v13 = vsub.f32 %v236_v9, %v243_v11  ;;  %v251_v14 = vsub.f32 %v237_v10, %v247_v12  ;;  %s657_s0 = scalar_lea.vmem %s656_s10, 64  ;;  %p658_p4 = scmp.lt.s32.totalorder %s1022_s8, %s656_s10 }
  0x60   : > { %p654_p13 = pneg %p653_p6  ;;  %p659_p10 = scmp.lt.s32.totalorder %s657_s0, %s651_s5 }
  0x61   : > { %v260_v15 = vsel %vm259_vm1, %v250_v13, 0.0  ;;  %v261_v16 = vsel %vm259_vm1, %v251_v14, 0.0 }
  0x62   : > { %v263_v17 = vrot.slane %v260_v15, 4  ;;  %v270_v18 = vsel %vm269_vm2, %v261_v16, 0.0  ;;  %v303_v19 = vmul.f32 %v261_v16, %v261_v16  ;;  %v302_v20 = vmul.f32 %v260_v15, %v260_v15  ;;  %p660_p12 = por %p659_p10, %p658_p4 }
  0x63   : > { %v271_v21 = vrot.slane %v270_v18, 4 }
  0x64   : > { %v264_v22 = vadd.f32 %v263_v17, %v260_v15  ;;  %v304_v23 = vrot.slane %v302_v20, 4  ;;  %v310_v24 = vsel %vm269_vm2, %v303_v19, 0.0  ;;  %p661_p5 = pnand %p660_p12, %p654_p13 }
  0x65   : > { %v272_v25 = vadd.f32 %v271_v21, %v270_v18  ;;  %v311_v28 = vrot.slane %v310_v24, 4 }
  0x66   : > { %v265_v29 = vrot.slane %v264_v22, 2  ;;  %v305_v30 = vadd.f32 %v304_v23, %v302_v20 }
  0x67   : > { %v273_v31 = vrot.slane %v272_v25, 2  ;;  %v312_v32 = vadd.f32 %v311_v28, %v310_v24 }
  0x68   : > { %v266_v33 = vadd.f32 %v265_v29, %v264_v22  ;;  %v306_v34 = vrot.slane %v305_v30, 2 }
  0x69   : > { %v274_v35 = vadd.f32 %v273_v31, %v272_v25  ;;  %v313_v37 = vrot.slane %v312_v32, 2 }
  0x6a   : > { %v267_v38 = vrot.slane %v266_v33, 1  ;;  %v307_v39 = vadd.f32 %v306_v34, %v305_v30 }
  0x6b   : > { %v275_v40 = vrot.slane %v274_v35, 1  ;;  %v314_v41 = vadd.f32 %v313_v37, %v312_v32 }
  0x6c   : > { %v268_v42 = vadd.f32 %v267_v38, %v266_v33  ;;  %v308_v43 = vrot.slane %v307_v39, 1 }
  0x6d   : > { %v276_v44 = vadd.f32 %v275_v40, %v274_v35  ;;  %v315_v46 = vrot.slane %v314_v41, 1 }
  0x6e   : > { %v309_v47 = vadd.f32 %v308_v43, %v307_v39 }
  0x6f   : > { %v279_v48 = vcombine.low %v268_v42, %v276_v44  ;;  %v316_v49 = vadd.f32 %v315_v46, %v314_v41 }
  0x71   : > { %v286_v50 = vrot.slane %v279_v48, %v285_v45  ;;  %v319_v51 = vcombine.low %v309_v47, %v316_v49 }
  0x73   : > { %v293_v53 = vrot.slane %v286_v50, %v285_v45  ;;  %v326_v54 = vrot.slane %v319_v51, %v285_v45 }
  0x75   : > { %v295_v57 = vadd.f32 %v293_v53, %v262_v52  ;;  %v333_v58 = vrot.slane %v326_v54, %v285_v45 }
  0x77   : > { %300 = vst.msk [vmem:[%s996_s29] sm:$0x3] %vm1011_vm3, %v295_v57  ;;  %v335_v59 = vadd.f32 %v333_v58, %v301_v56 }
  0x78   : > { %664 = shalt.err (!%p661_p5)
}
  0x79   : > { %s665_s29 = scalar_lea.hbm %s1020_s7, 32  ;;  %s669_s30 = scalar_lea.hbm %s1120_s2, 64 }
  0x7a   : > { %p666_p0 = scmp.ne.s32.totalorder %s1020_s7, %s665_s29  ;;  %p670_p8 = scmp.lt.u32.totalorder %s1020_s7, %s1120_s2 }
  0x7b   : > { %p671_p11 = scmp.lt.u32.totalorder %s669_s30, %s665_s29  ;;  %p673_p9 = scmp.lt.u32.totalorder %s665_s29, %s1020_s7 }
  0x7c   : > { %p667_p1 = pnand %p666_p0, %p1136_p3 }
  0x7d   : > { %p672_p2 = por %p671_p11, %p670_p8 }
  0x7e   : > { %p668_p7 = pneg %p667_p1 }
  0x7f   : > { %p674_p6 = por %p673_p9, %p672_p2 }
  0x81   : > { %p675_p13 = pnand %p674_p6, %p668_p7 }
  0x83   : > { %678 = shalt.err (!%p675_p13)
}
  0x84   : > { %514 = dma.vmem_to_hbm [thread:$0]  (%p1136_p3), %s1022_s8, 32, %s1020_s7, %s338_s23   ;;  %336 = vst.msk [vmem:[%s998_s28] sm:$0x3] %vm1011_vm3, %v335_v59 }
  0x85   : > { %s343_s0 = scalar_lea.sflag [#allocation7], %s993_s26  ;;  %s679_s5 = scalar_lea.vmem %s1032_s24, 32 }
  0x86   : > { %p680_p4 = scmp.ne.s32.totalorder %s1032_s24, %s679_s5  ;;  %s811_s29 = smov [#allocation6]  }
  0x87   : > { %s683_s18 = sshll.u32 %s811_s29, 4  ;;  %s684_s18 = int_to_ptr.vmem [resolvable:$false] %s683_s18 }
  0x88   : > { %p681_p10 = pnand %p680_p4, %p1136_p3  ;;  %s685_s19 = scalar_lea.vmem %s684_s18, 64 }
  0x89   : > { %p686_p5 = scmp.lt.s32.totalorder %s1032_s24, %s684_s18  ;;  %p687_p0 = scmp.lt.s32.totalorder %s685_s19, %s679_s5 }
  0x8a   : > { %p682_p12 = pneg %p681_p10 }
  0x8b   : > { %p688_p1 = por %p687_p0, %p686_p5 }
  0x8d   : > { %p689_p7 = pnand %p688_p1, %p682_p12 }
  0x8f   : > { %692 = shalt.err (!%p689_p7)
}
  0x90   : > { %s693_s26 = scalar_lea.hbm %s1030_s6, 32  ;;  %s697_s7 = scalar_lea.hbm %s1121_s3, 64 }
  0x91   : > { %p694_p8 = scmp.ne.s32.totalorder %s1030_s6, %s693_s26  ;;  %p698_p9 = scmp.lt.u32.totalorder %s1030_s6, %s1121_s3 }
  0x92   : > { %p699_p6 = scmp.lt.u32.totalorder %s697_s7, %s693_s26  ;;  %p701_p4 = scmp.lt.u32.totalorder %s693_s26, %s1030_s6 }
  0x93   : > { %p695_p11 = pnand %p694_p8, %p1136_p3 }
  0x94   : > { %p700_p13 = por %p699_p6, %p698_p9 }
  0x95   : > { %p696_p2 = pneg %p695_p11 }
  0x96   : > { %p702_p10 = por %p701_p4, %p700_p13 }
  0x98   : > { %p703_p12 = pnand %p702_p10, %p696_p2 }
  0x9a   : > { %706 = shalt.err (!%p703_p12)
}
  0x9b   : > { %515 = dma.vmem_to_hbm [thread:$0]  (%p1136_p3), %s1032_s24, 32, %s1030_s6, %s343_s0  }
  0x9c PF: > { %p530_p5 = scmp.ge.s32.totalorder %s805_s22, 2  ;;  %s383_s4 = sand.u32 1, %s765_s12  }
  0x9d   : > { %p1137_p0 = scmp.ne.s32.totalorder %s1129_s27, 0  ;;  %s384_s10 = scalar_lea.sflag [#allocation4], %s383_s4 }
  0x9f   : > { %p523_p1 = pnand %p530_p5, %p1137_p0 }
  0xa1   : > { %756 = dma.done.wait (!%p523_p1), %s384_s10, 32  }
  0xa2   : > { %758 = vsyncadd (!%p523_p1), %s384_s10, 4294967264  ;;  %s393_s5 = scalar_lea.sflag [#allocation7], %s383_s4 }
  0xa3   : > { %760 = dma.done.wait (!%p523_p1), %s393_s5, 32  }
  0xa4   : > { %762 = vsyncadd (!%p523_p1), %s393_s5, 4294967264  ;;  %s23_s22 = sadd.s32 1, %s805_s22   ;;  %s1138_s27 = sld [smem:[#allocation11_spill]] }
  0xa5   : > { %p20_p7 = scmp.ge.s32.totalorder %s23_s22, 6   ;;  %s1139_s12 = smov %s769_s13 }
  0xa6   : > { %s1140_s13 = smov %s773_s14  ;;  %s1141_s14 = smov %s920_s9 }
  0xa7   : > { %s1142_s15 = smov %s781_s16  ;;  %s1143_s16 = smov %s785_s17 }
  0xa8   : > { %s1144_s17 = smov %s931_s11  ;;  %s1145_s18 = smov %s797_s20 }
  0xa9   : > { %s1146_s19 = smov %s801_s21  ;;  %s1147_s20 = smov %s1150_s25 }
  0xaa   : > { %s1148_s21 = smov %s1138_s27  ;;  %22 = sbr.rel (!%p20_p7) target bundleno = 13 (0xd), region = 94 }
  0xb1   :  { %398 = vsyncpa [#allocation3], 1 }
  0xb2   :  { %400 = vsyncpa [#allocation3 + $0x1], 1 }
  0xb3   :  { %401 = vsyncpa [#allocation4], 1 }
  0xb4   :  { %403 = vsyncpa [#allocation4 + $0x1], 1 }
  0xb5   :  { %404 = vsyncpa [#allocation7], 1 }
  0xb6   :  { %406 = vsyncpa [#allocation7 + $0x1], 1 }

</bundles_post_ra>
